<compile_context>
chip_gen: v6e
topology: v6e:2x2x1
jax: 0.10.0
libtpu: 0.0.40
codegen_flags: <defaults>
</compile_context>

<pallas_src>
import functools
import math

import jax
import jax.numpy as jnp
from jax import lax
from jax.experimental import pallas as pl
from jax.experimental.pallas import tpu as pltpu

_LANES = 128  # TPU vreg lane width


# --------------------------------------------------------------------------- #
# Kernel
# --------------------------------------------------------------------------- #
def _pe_kernel(scale_ref, base_ref, out_ref, *, row_varying, pos_per_row,
               pos_per_tile):
    """Write one (tile_rows, lane_width) tile: out = sin(pos * scale + base).

    `scale`/`base` are host-precomputed maps (constant index_map -> DMA'd once,
    VMEM-resident across grid steps):
      * row_varying=True : maps are (1, lane_width); the position varies down
        the sublane axis of the tile (natural layout, or lane-dense layout
        when 128 % d_model == 0).
      * row_varying=False: maps are (tile_rows, lane_width) and already encode
        the within-tile position; only a per-tile scalar offset remains
        (general lane-dense layout for d_model that does not divide 128).
    cos columns are folded in as sin(x + pi/2) via `base`, so there is a
    single transcendental and no select.
    """
    tile_rows = out_ref.shape[0]
    if row_varying:
        r = lax.broadcasted_iota(jnp.int32, (tile_rows, 1), 0)
        row = pl.program_id(0) * tile_rows + r
        if pos_per_row != 1:                      # skip *1 in the natural path
            row = row * pos_per_row
        pos = row.astype(jnp.float32)             # (tile_rows, 1)
    else:
        pos = (pl.program_id(0) * pos_per_tile).astype(jnp.float32)  # scalar
    out_ref[...] = jnp.sin(pos * scale_ref[...] + base_ref[...]).astype(
        out_ref.dtype)


# --------------------------------------------------------------------------- #
# Host-side helpers
# --------------------------------------------------------------------------- #
def _build_maps(lane_width, d_model, map_rows):
    """Precompute the per-lane (or per-(row, lane)) scale/base maps in f32.

    scale = 1 / 10000 ** (2i / d_model)         (per-dimension frequency)
    base  = pos_offset * scale + phase           (phase = pi/2 on odd dims)
    """
    lane = jnp.arange(lane_width, dtype=jnp.int32)[None, :]
    if map_rows == 1:
        if lane_width == d_model:                 # natural (max_len, d_model)
            dim = lane
            pos_off = jnp.zeros((1, lane_width), jnp.float32)
        else:                                     # lane-dense, 128 % d_model == 0
            dim = lane % d_model
            pos_off = (lane // d_model).astype(jnp.float32)
    else:                                         # general lane-dense layout
        r = jnp.arange(map_rows, dtype=jnp.int32)[:, None]
        flat = r * lane_width + lane
        dim = flat % d_model
        pos_off = (flat // d_model).astype(jnp.float32)

    two_i = ((dim // 2) * 2).astype(jnp.float32)
    scale = jnp.exp(two_i * jnp.float32(-math.log(10000.0) / d_model))
    phase = (dim % 2).astype(jnp.float32) * jnp.float32(math.pi / 2.0)
    base = pos_off * scale + phase
    return scale.astype(jnp.float32), base.astype(jnp.float32)


def _pick_tile_rows(n_rows, row_bytes, align, max_tile_bytes,
                    min_grid=4, min_rows_per_step=512):
    """Aligned tile height balancing VMEM budget, >=min_grid steps (feed both
    v7x TensorCores / overlap the pipeline) and a per-step-overhead floor."""
    rup = lambda x, m: ((x + m - 1) // m) * m
    rdn = lambda x, m: (x // m) * m
    n_al = rup(n_rows, align)
    cap = max(align, rdn(max_tile_bytes // max(row_bytes, 1), align))
    split = rup(max(-(-n_al // min_grid), 1), align)
    floor = max(align, rup(min(min_rows_per_step, n_al), align))
    return min(n_al, cap, max(split, floor))


# --------------------------------------------------------------------------- #
# Public API
# --------------------------------------------------------------------------- #
def build_encoding_table(max_len, d_model, *, out_dtype=jnp.float32,
                         max_tile_bytes=8 << 20):
    """Equivalent of PositionalEncoding.__init__: the (max_len, d_model) buffer.

    out_dtype=jnp.bfloat16 halves HBM writeback (and the consumer's read) if
    the consumer is bf16; math stays f32 inside the kernel either way.
    Defaults keep the double-buffered tile <= 16 MiB (safe on v7x's 64 MiB).
    """
    elem_bytes = jnp.dtype(out_dtype).itemsize
    sub_mult = max(8, 32 // elem_bytes)           # 8 f32 / 16 bf16 / 32 int8

    total = max_len * d_model
    if d_model < _LANES:
        # Lane-dense slab: row-major flatten of (pos, dim) into (rows, 128).
        lane_width = _LANES
        period = d_model // math.gcd(d_model, _LANES)  # rows per aligned group
        row_varying = (period == 1)
        pos_per_row = _LANES // d_model if row_varying else 0
        row_align = sub_mult * period // math.gcd(sub_mult, period)
        n_rows = -(-total // _LANES)
        flat = True
    else:
        lane_width = d_model                      # natural (max_len, d_model)
        period = 1
        row_varying = True
        pos_per_row = 1
        row_align = sub_mult
        n_rows = max_len
        flat = False

    # General lane-dense maps are tile-sized; keep them modest.
    eff_tile_bytes = max_tile_bytes if row_varying else max(max_tile_bytes // 4, 1)
    tile_rows = _pick_tile_rows(n_rows, lane_width * elem_bytes, row_align,
                                eff_tile_bytes)
    grid = -(-n_rows // tile_rows)
    n_rows_pad = grid * tile_rows                 # padded rows, sliced off below

    map_rows = 1 if row_varying else tile_rows
    pos_per_tile = (tile_rows * lane_width) // d_model if not row_varying else 0
    scale, base = _build_maps(lane_width, d_model, map_rows)

    out_tile_bytes = tile_rows * lane_width * elem_bytes
    map_bytes = map_rows * lane_width * 4
    vmem_limit = min(max(2 * out_tile_bytes + 4 * map_bytes + (2 << 20),
                         16 << 20), 64 << 20)

    table = pl.pallas_call(
        functools.partial(_pe_kernel, row_varying=row_varying,
                          pos_per_row=pos_per_row, pos_per_tile=pos_per_tile),
        out_shape=jax.ShapeDtypeStruct((n_rows_pad, lane_width), out_dtype),
        grid=(grid,),
        in_specs=[pl.BlockSpec((map_rows, lane_width), lambda i: (0, 0)),
                  pl.BlockSpec((map_rows, lane_width), lambda i: (0, 0))],
        out_specs=pl.BlockSpec((tile_rows, lane_width), lambda i: (i, 0)),
        compiler_params=pltpu.CompilerParams(
            dimension_semantics=("parallel",),    # independent row tiles
            vmem_limit_bytes=vmem_limit,
        ),
    )(scale, base)

    if flat:
        table = table.reshape(-1)[:total].reshape(max_len, d_model)
    else:
        table = table[:max_len]
    return table


def positional_encoding_forward(x, encoding):
    """Equivalent of PositionalEncoding.forward: encoding[:batch_size, :seq_len]."""
    # TODO(synk): the PyTorch slice [:batch, :seq] is almost certainly not the
    # intended PE semantics ([:seq_len, :d_model] broadcast over batch), but we
    # reproduce it exactly.  The bigger win is fusing PE generation into the
    # consumer kernel and skipping the HBM round trip of the table entirely.
    batch_size, seq_len = x.shape
    return encoding[:batch_size, :seq_len]


# --------------------------------------------------------------------------- #
# Self-test
# --------------------------------------------------------------------------- #
if __name__ == "__main__":
    def reference_table(max_len, d_model):
        pos = jnp.arange(max_len, dtype=jnp.float32)[:, None]
        two_i = jnp.arange(0, d_model, 2, dtype=jnp.float32)
        div = 10000.0 ** (two_i / d_model)
        ref = jnp.zeros((max_len, d_model), jnp.float32)
        ref = ref.at[:, 0::2].set(jnp.sin(pos / div))
        ref = ref.at[:, 1::2].set(jnp.cos(pos / div))
        return ref

    # --- module-consistent toy shapes: d_model=32, max_len=64, x: (2, 8) ---
    d_model, max_len = 32, 64
    batch_size, seq_len = 2, 8

    key = jax.random.PRNGKey(0)
    # x's values are irrelevant (only its shape is used), as in the module.
    x = jax.random.randint(key, (batch_size, seq_len), 0, 100, dtype=jnp.int32)

    encoding = jax.block_until_ready(build_encoding_table(max_len, d_model))
    assert encoding.shape == (max_len, d_model)
    assert jnp.allclose(encoding, reference_table(max_len, d_model), atol=5e-4)

    out = jax.block_until_ready(positional_encoding_forward(x, encoding))
    assert out.shape == (batch_size, seq_len)
    assert jnp.allclose(
        out, reference_table(max_len, d_model)[:batch_size, :seq_len], atol=5e-4)

    # --- natural-layout path (d_model multiple of 128), forced multi-step ---
    enc2 = jax.block_until_ready(
        build_encoding_table(128, 128, max_tile_bytes=16 << 10))
    assert jnp.allclose(enc2, reference_table(128, 128), atol=5e-4)

    # --- natural-layout path with row padding (max_len not multiple of 8) ---
    enc3 = jax.block_until_ready(build_encoding_table(60, 128))
    assert enc3.shape == (60, 128)
    assert jnp.allclose(enc3, reference_table(60, 128), atol=5e-4)

    # --- general lane-dense path (d_model < 128, not a divisor of 128) ---
    enc4 = jax.block_until_ready(build_encoding_table(40, 48))
    assert enc4.shape == (40, 48)
    assert jnp.allclose(enc4, reference_table(40, 48), atol=5e-4)

    # --- general lane-dense path, forced multi-tile grid ---
    enc5 = jax.block_until_ready(
        build_encoding_table(512, 48, max_tile_bytes=128 << 10))
    assert enc5.shape == (512, 48)
    assert jnp.allclose(enc5, reference_table(512, 48), atol=5e-4)

    # --- bf16 output path (dtype-aware 16-row sublane alignment) ---
    enc6 = jax.block_until_ready(
        build_encoding_table(64, 256, out_dtype=jnp.bfloat16))
    assert enc6.dtype == jnp.bfloat16
    assert jnp.allclose(enc6.astype(jnp.float32), reference_table(64, 256),
                        atol=1e-2)

    print("KERNEL_OK")
</pallas_src>

<mosaic_0001>
module attributes {stable_mosaic.version = 11 : i64} {
  func.func @_pe_kernel(%arg0: i32, %arg1: memref<1x128xf32, #tpu.memory_space<vmem>>, %arg2: memref<1x128xf32, #tpu.memory_space<vmem>>, %arg3: memref<16x128xf32, #tpu.memory_space<vmem>>) attributes {dimension_semantics = [#tpu.dimension_semantics<parallel>], iteration_bounds = array<i64: 1>, scalar_prefetch = 0 : i64, scratch_operands = 0 : i64, tpu.core_type = #tpu.core_type<tc>, window_params = [{pipeline_mode = #tpu.pipeline_mode<synchronous>, transform_indices = @transform_0, window_bounds = array<i64: 1, 128>}, {pipeline_mode = #tpu.pipeline_mode<synchronous>, transform_indices = @transform_1, window_bounds = array<i64: 1, 128>}, {transform_indices = @transform_2, window_bounds = array<i64: 16, 128>}]} {
    %0 = tpu.iota {dimensions = array<i32: 0>} : vector<16x1xi32>
    %c16_i32 = arith.constant 16 : i32
    %1 = arith.muli %arg0, %c16_i32 : i32
    %2 = vector.broadcast %1 : i32 to vector<16x1xi32>
    %3 = arith.addi %2, %0 : vector<16x1xi32>
    %c4_i32 = arith.constant 4 : i32
    %4 = vector.broadcast %c4_i32 : i32 to vector<16x1xi32>
    %5 = arith.muli %3, %4 : vector<16x1xi32>
    %6 = arith.sitofp %5 : vector<16x1xi32> to vector<16x1xf32>
    %c0 = arith.constant 0 : index
    %c0_0 = arith.constant 0 : index
    %7 = vector.load %arg1[%c0, %c0_0] : memref<1x128xf32, #tpu.memory_space<vmem>>, vector<1x128xf32>
    %8 = vector.broadcast %6 : vector<16x1xf32> to vector<16x128xf32>
    %9 = vector.broadcast %7 : vector<1x128xf32> to vector<16x128xf32>
    %10 = arith.mulf %8, %9 : vector<16x128xf32>
    %c0_1 = arith.constant 0 : index
    %c0_2 = arith.constant 0 : index
    %11 = vector.load %arg2[%c0_1, %c0_2] : memref<1x128xf32, #tpu.memory_space<vmem>>, vector<1x128xf32>
    %12 = vector.broadcast %11 : vector<1x128xf32> to vector<16x128xf32>
    %13 = arith.addf %10, %12 : vector<16x128xf32>
    %14 = math.sin %13 : vector<16x128xf32>
    %c0_3 = arith.constant 0 : index
    %c0_4 = arith.constant 0 : index
    %15 = vector.load %arg3[%c0_3, %c0_4] : memref<16x128xf32, #tpu.memory_space<vmem>>, vector<16x128xf32>
    tpu.vector_store %arg3[%c0_3, %c0_4], %14 {strides = array<i32>} : memref<16x128xf32, #tpu.memory_space<vmem>>, vector<16x128xf32>,
    return
  }
  func.func @transform_0(%arg0: i32) -> (i32, i32) {
    %c0_i32 = arith.constant 0 : i32
    %c0_i32_0 = arith.constant 0 : i32
    %c0_i32_1 = arith.constant 0 : i32
    return %c0_i32, %c0_i32_0 : i32, i32
  }
  func.func @transform_1(%arg0: i32) -> (i32, i32) {
    %c0_i32 = arith.constant 0 : i32
    %c0_i32_0 = arith.constant 0 : i32
    %c0_i32_1 = arith.constant 0 : i32
    return %c0_i32, %c0_i32_0 : i32, i32
  }
  func.func @transform_2(%arg0: i32) -> (i32, i32) {
    %c0_i32 = arith.constant 0 : i32
    %c0_i32_0 = arith.constant 0 : i32
    return %arg0, %c0_i32 : i32, i32
  }
}

</mosaic_0001>

<bundles_post_ra>
// kernel: tpu_custom_call.1
= control target key start
LH: loop header
LB: loop body
LE: loop exit
PB: predicated region body
PF: predicated region fallthrough
CT: control target
= control target key end

     0   :  { %7 = vsyncpa [#allocation3], 0  ;;  %s470_s0 = inlined_call_operand.hbm [shape: f32[1,128], index: 0, kind: input, shape index: {}]   ;;  %s471_s1 = inlined_call_operand.vmem [shape: f32[1,128], index: 1, kind: input, shape index: {}]   ;;  %s472_s2 = inlined_call_operand.hbm [shape: f32[16,128], index: 2, kind: output, shape index: {}]  }
   0x1   :  { %8 = vsyncpa [#allocation4], 0  ;;  %s360_s9 = smov [#allocation2]  }
   0x2   :  { %s15_s10 = sshll.u32 %s360_s9, 4  ;;  %s16_s10 = int_to_ptr.vmem [resolvable:$true] %s15_s10 }
   0x3   :  { %s324_s11 = scalar_lea.vmem %s16_s10, 16  ;;  %s328_s12 = scalar_lea.vmem %s16_s10, 32 }
   0x4   :  { %p325_p0 = scmp.ne.s32.totalorder %s16_s10, %s324_s11  ;;  %p329_p1 = scmp.lt.s32.totalorder %s16_s10, %s16_s10 }
   0x5   :  { %p330_p2 = scmp.lt.s32.totalorder %s328_s12, %s324_s11 }
   0x7   :  { %p331_p3 = por %p330_p2, %p329_p1 }
   0x9   :  { %p332_p4 = pnand %p331_p3, %p325_p0 }
   0xb   :  { %335 = shalt.err (!%p332_p4)
}
   0xc   :  { %18 = dma.hbm_to_vmem [thread:$0]  %s470_s0, 16, %s16_s10, [#allocation3]  }
   0xd   :  { %356 = dma.done.wait [#allocation3], 16  }
   0xe   :  { %357 = vsyncadd [#allocation3], 4294967280  ;;  %v24_v0 = vlaneseq  ;;  %v280_v6 = vld [vmem:[#allocation2] ss:$0 sm:$0xff]  ;;  %v361_v32 = vmov 683565275  }
   0xf   :  { %v281_v7 = vld [vmem:[%s471_s1] ss:$0 sm:$0xff]  ;;  %v362_v34 = vmov 2475754826   ;;  %v363_v36 = vmov 2131351028  }
  0x10   :  { %v25_v1 = vshrl.u32 %v24_v0, 7  ;;  %v364_v38 = vmov 2102212464   ;;  %v365_v40 = vmov 920167782   ;;  %s367_s0 = smov [#allocation5]  }
  0x11   :  { %v366_v47 = vmov 1326507024   ;;  %s268_s1 = sshll.u32 %s367_s0, 4  ;;  %s269_s1 = int_to_ptr.vmem [resolvable:$true] %s268_s1 }
  0x12   :  { %v31_v2 = vmul.u32 4, %v25_v1  ;;  %v26_v3 = vadd.s32 8, %v25_v1  ;;  %s336_s17 = scalar_lea.vmem %s269_s1, 256  ;;  %p341_p6 = scmp.lt.s32.totalorder %s269_s1, %s269_s1 }
  0x13   :  { %p337_p5 = scmp.ne.s32.totalorder %s269_s1, %s336_s17  ;;  %p342_p7 = scmp.lt.s32.totalorder %s336_s17, %s336_s17 }
  0x14   :  { %v33_v4 = vcvt.s32.f32 %v31_v2  ;;  %v32_v5 = vmul.u32 4, %v26_v3 }
  0x15   :  { %p343_p8 = por %p342_p7, %p341_p6 }
  0x16   :  { %v42_v8 = vmul.f32 %v280_v6, %v33_v4  ;;  %v34_v9 = vcvt.s32.f32 %v32_v5 }
  0x17   :  { %p344_p9 = pnand %p343_p8, %p337_p5 }
  0x18   :  { %v391_v10 = vadd.f32 %v281_v7, %v42_v8  ;;  %v43_v11 = vmul.f32 %v280_v6, %v34_v9 }
  0x1a   :  { %v53_v12 = vand.u32 2147483647, %v391_v10  ;;  %v56_v13 = vand.u32 2139095040, %v391_v10  ;;  %v395_v14 = vadd.f32 %v281_v7, %v43_v11  ;;  %vm55_vm14 = vcmp.lt.s32.totalorder %v391_v10, 0 }
  0x1c   :  { %v57_v15 = vshrl.u32 %v56_v13, 23  ;;  %v60_v16 = vand.u32 8388607, %v53_v12  ;;  %v157_v17 = vand.u32 2147483647, %v395_v14  ;;  %v160_v18 = vand.u32 2139095040, %v395_v14 }
  0x1d   :  { %vm54_vm15 = vcmp.le.f32.partialorder %v53_v12, 0.7853982 }
  0x1e   :  { %v282_v19 = vadd.s32 4294967169, %v57_v15  ;;  %v161_v20 = vshrl.u32 %v160_v18, 23  ;;  %v61_v22 = vor.u32 8388608, %v60_v16  ;;  %v403_v24 = vand.u32 8388607, %v157_v17 }
  0x20   :  { %v63_v21 = vadd.s32 1, %v282_v19  ;;  %v286_v23 = vadd.s32 4294967169, %v161_v20  ;;  %v405_v29 = vshll.u32 %v61_v22, 8  ;;  %v165_v30 = vor.u32 8388608, %v403_v24 }
  0x22   :  { %vm64_vm0 = vcmp.gt.s32.totalorder %v63_v21, 0  ;;  %v167_v26 = vadd.s32 1, %v286_v23 }
  0x23   :  { %v65_v25 = vsel %vm64_vm0, %v63_v21, 0  ;;  %vm159_vm0 = vcmp.lt.s32.totalorder %v395_v14, 0 }
  0x24   :  { %v66_v27 = vshrl.u32 %v65_v25, 5  ;;  %v67_v28 = vand.u32 31, %v65_v25  ;;  %vm168_vm1 = vcmp.gt.s32.totalorder %v167_v26, 0 }
  0x25   :  { %v169_v52 = vsel %vm168_vm1, %v167_v26, 0  ;;  %vm456_vm1 = vcmp.le.f32.partialorder %v157_v17, 0.7853982 }
  0x26   :  { %v68_v31 = vsub.s32 32, %v67_v28  ;;  %v70_v33 = vshll.u32 %v361_v32, %v67_v28  ;;  %v73_v35 = vshll.u32 %v362_v34, %v67_v28  ;;  %v76_v37 = vshll.u32 %v363_v36, %v67_v28 }
  0x27   :  { %v79_v39 = vshll.u32 %v364_v38, %v67_v28  ;;  %v82_v41 = vshll.u32 %v365_v40, %v67_v28  ;;  %vm85_vm2 = vcmp.lt.s32.totalorder %v66_v27, 1  ;;  %vm86_vm3 = vcmp.lt.s32.totalorder %v66_v27, 2 }
  0x28   :  { %v69_v42 = vshrl.u32 %v361_v32, %v68_v31  ;;  %v71_v43 = vshrl.u32 %v362_v34, %v68_v31  ;;  %v74_v44 = vshrl.u32 %v363_v36, %v68_v31  ;;  %v77_v45 = vshrl.u32 %v364_v38, %v68_v31 }
  0x29   :  { %v80_v46 = vshrl.u32 %v365_v40, %v68_v31  ;;  %v83_v48 = vshrl.u32 %v366_v47, %v68_v31  ;;  %vm87_vm4 = vcmp.lt.s32.totalorder %v66_v27, 3  ;;  %vm88_vm5 = vcmp.lt.s32.totalorder %v66_v27, 4 }
  0x2a   :  { %v72_v49 = vor.u32 %v71_v43, %v70_v33  ;;  %v75_v50 = vor.u32 %v74_v44, %v73_v35  ;;  %v78_v51 = vor.u32 %v77_v45, %v76_v37  ;;  %v170_v55 = vshrl.u32 %v169_v52, 5 }
  0x2b   :  { %v81_v53 = vor.u32 %v80_v46, %v79_v39  ;;  %v84_v54 = vor.u32 %v83_v48, %v82_v41  ;;  %v171_v56 = vand.u32 31, %v169_v52 }
  0x2c   :  { %v89_v57 = vsel %vm85_vm2, %v69_v42, %v72_v49  ;;  %v90_v58 = vsel %vm88_vm5, %v78_v51, 2102212464  ;;  %v93_v59 = vsel %vm85_vm2, %v72_v49, %v75_v50  ;;  %v97_v60 = vsel %vm85_vm2, %v75_v50, %v78_v51 }
  0x2d   :  { %v91_v61 = vsel %vm87_vm4, %v75_v50, %v90_v58  ;;  %v94_v62 = vsel %vm88_vm5, %v81_v53, 920167782  ;;  %v98_v63 = vsel %vm88_vm5, %v84_v54, 1326507024  ;;  %v172_v0 = vsub.s32 32, %v171_v56 }
  0x2e   :  { %v92_v1 = vsel %vm86_vm3, %v89_v57, %v91_v61  ;;  %v95_v2 = vsel %vm87_vm4, %v78_v51, %v94_v62  ;;  %v99_v3 = vsel %vm87_vm4, %v81_v53, %v98_v63  ;;  %v174_v4 = vshll.u32 %v361_v32, %v171_v56 }
  0x2f   :  { %v96_v5 = vsel %vm86_vm3, %v93_v59, %v95_v2  ;;  %v100_v6 = vsel %vm86_vm3, %v97_v60, %v99_v3  ;;  %v108_v7 = vmul.u32 %v405_v29, %v92_v1  ;;  %v173_v8 = vshrl.u32 %v361_v32, %v172_v0 }
  0x30   :  { %v420_v9 = vmul.u32.u64.low %v405_v29, %v100_v6  ;;  %v421_v11 = vmul.u32.u64.high %v405_v29, %v100_v6, %v420_v9  ;;  %v424_v13 = vmul.u32.u64.low %v405_v29, %v96_v5  ;;  %v425_v15 = vmul.u32.u64.high %v405_v29, %v96_v5, %v424_v13 }
  0x31   :  { %v175_v16 = vshrl.u32 %v362_v34, %v172_v0  ;;  %v177_v18 = vshll.u32 %v362_v34, %v171_v56  ;;  %v178_v19 = vshrl.u32 %v363_v36, %v172_v0  ;;  %v180_v20 = vshll.u32 %v363_v36, %v171_v56 }
  0x32   :  { %v181_v21 = vshrl.u32 %v364_v38, %v172_v0  ;;  %v183_v22 = vshll.u32 %v364_v38, %v171_v56  ;;  %v184_v23 = vshrl.u32 %v365_v40, %v172_v0  ;;  %v186_v25 = vshll.u32 %v365_v40, %v171_v56 }
  0x33   :  { %v176_v26 = vor.u32 %v175_v16, %v174_v4  ;;  %v179_v27 = vor.u32 %v178_v19, %v177_v18  ;;  %v187_v28 = vshrl.u32 %v366_v47, %v172_v0  ;;  %vm189_vm6 = vcmp.lt.s32.totalorder %v170_v55, 1 }
  0x34   :  { %vm110_vm7 = vc.u32 %v421_v11, %v424_v13  ;;  %v111_v31 = vadd.s32 1, %v425_v15  ;;  %v182_v32 = vor.u32 %v181_v21, %v180_v20  ;;  %v205_v29 = vshll.u32 %v165_v30, 8 }
  0x35   :  { %v185_v33 = vor.u32 %v184_v23, %v183_v22  ;;  %v188_v34 = vor.u32 %v187_v28, %v186_v25  ;;  %vm190_vm8 = vcmp.lt.s32.totalorder %v170_v55, 2  ;;  %vm191_vm9 = vcmp.lt.s32.totalorder %v170_v55, 3 }
  0x36   :  { %v112_v35 = vsel %vm110_vm7, %v111_v31, %v425_v15  ;;  %vm192_vm10 = vcmp.lt.s32.totalorder %v170_v55, 4  ;;  %v193_v36 = vsel %vm189_vm6, %v173_v8, %v176_v26  ;;  %v197_v37 = vsel %vm189_vm6, %v176_v26, %v179_v27 }
  0x37   :  { %v113_v38 = vadd.s32 %v112_v35, %v108_v7  ;;  %v194_v39 = vsel %vm192_vm10, %v182_v32, 2102212464  ;;  %v198_v40 = vsel %vm192_vm10, %v185_v33, 920167782  ;;  %v201_v41 = vsel %vm189_vm6, %v179_v27, %v182_v32 }
  0x38   :  { %v195_v42 = vsel %vm191_vm9, %v179_v27, %v194_v39  ;;  %v199_v43 = vsel %vm191_vm9, %v182_v32, %v198_v40  ;;  %v202_v24 = vsel %vm192_vm10, %v188_v34, 1326507024  ;;  %v109_v2 = vadd.s32 %v424_v13, %v421_v11 }
  0x39   :  { %v114_v30 = vadd.s32 536870912, %v113_v38  ;;  %v200_v44 = vsel %vm190_vm8, %v197_v37, %v199_v43  ;;  %v203_v45 = vsel %vm191_vm9, %v185_v33, %v202_v24  ;;  %v196_v46 = vsel %vm190_vm8, %v193_v36, %v195_v42 }
  0x3a   :  { %v204_v47 = vsel %vm190_vm8, %v201_v41, %v203_v45  ;;  %v438_v48 = vmul.u32.u64.low %v205_v29, %v200_v44  ;;  %v439_v49 = vmul.u32.u64.high %v205_v29, %v200_v44, %v438_v48  ;;  %v212_v54 = vmul.u32 %v205_v29, %v196_v46 }
  0x3b   :  { %v115_v50 = vshrl.u32 %v114_v30, 30  ;;  %v441_v51 = vmul.u32.u64.low %v205_v29, %v204_v47  ;;  %v442_v52 = vmul.u32.u64.high %v205_v29, %v204_v47, %v441_v51  ;;  %vm145_vm5 = vweird.f32 %v391_v10 }
  0x3c   :  { %v215_v56 = vadd.s32 1, %v439_v49  ;;  %vm249_vm9 = vweird.f32 %v395_v14 }
  0x3d   :  { %v116_v53 = vshll.u32 %v115_v50, 30  ;;  %vm214_vm11 = vc.u32 %v442_v52, %v438_v48  ;;  %v213_v26 = vadd.s32 %v438_v48, %v442_v52  ;;  %v139_v27 = vsub.s32 4, %v115_v50 }
  0x3e   :  { %v216_v58 = vsel %vm214_vm11, %v215_v56, %v439_v49 }
  0x3f   :  { %v117_v57 = vsub.s32 %v113_v38, %v116_v53  ;;  %v217_v60 = vadd.s32 %v216_v58, %v212_v54  ;;  %v140_v36 = vsel %vm55_vm14, %v139_v27, %v115_v50 }
  0x40   :  { %v142_v42 = vsel %vm54_vm15, 0, %v140_v36 }
  0x41   :  { %v119_v59 = vsub.s32 0, %v117_v57  ;;  %v218_v61 = vadd.s32 536870912, %v217_v60  ;;  %v146_v24 = vadd.s32 3, %v142_v42 }
  0x43   :  { %v283_v55 = vmin.u32 %v119_v59, %v117_v57  ;;  %v219_v63 = vshrl.u32 %v218_v61, 30  ;;  %v147_v46 = vand.u32 3, %v146_v24 }
  0x45   :  { %v121_v62 = vclz %v283_v55  ;;  %v220_v1 = vshll.u32 %v219_v63, 30  ;;  %v243_v12 = vsub.s32 4, %v219_v63  ;;  %vm152_vm2 = vcmp.eq.s32.totalorder %v147_v46, 2 }
  0x46   :  { %vm149_vm3 = vcmp.eq.s32.totalorder %v147_v46, 0  ;;  %vm148_vm4 = vcmp.lt.s32.totalorder %v147_v46, 2 }
  0x47   :  { %v284_v0 = vadd.s32 4294967294, %v121_v62  ;;  %v221_v4 = vsub.s32 %v217_v60, %v220_v1  ;;  %v244_v48 = vsel %vm159_vm0, %v243_v12, %v219_v63 }
  0x48   :  { %v246_v51 = vsel %vm456_vm1, 0, %v244_v48 }
  0x49   :  { %vm285_vm12 = vcmp.lt.s32.totalorder %v284_v0, 0  ;;  %v223_v8 = vsub.s32 0, %v221_v4  ;;  %v250_v56 = vadd.s32 3, %v246_v51 }
  0x4a   :  { %v124_v3 = vsel %vm285_vm12, 0, %v284_v0 }
  0x4b   :  { %v125_v5 = vsub.s32 32, %v124_v3  ;;  %v126_v6 = vshll.u32 %v117_v57, %v124_v3  ;;  %v129_v7 = vsub.s32 4294967266, %v124_v3  ;;  %v287_v16 = vmin.u32 %v223_v8, %v221_v4 }
  0x4c   :  { %v251_v60 = vand.u32 3, %v250_v56 }
  0x4d   :  { %v127_v9 = vshrl.u32 %v109_v2, %v125_v5  ;;  %v130_v15 = vadd.s32 127, %v129_v7  ;;  %v225_v20 = vclz %v287_v16 }
  0x4e   :  { %vm256_vm6 = vcmp.eq.s32.totalorder %v251_v60, 2  ;;  %vm253_vm7 = vcmp.eq.s32.totalorder %v251_v60, 0  ;;  %vm252_vm8 = vcmp.lt.s32.totalorder %v251_v60, 2 }
  0x4f   :  { %v128_v18 = vor.u32 %v127_v9, %v126_v6  ;;  %v131_v19 = vshll.u32 %v130_v15, 23  ;;  %v288_v23 = vadd.s32 4294967294, %v225_v20 }
  0x51   :  { %v132_v21 = vor.u32 4788187, %v131_v19  ;;  %v135_v22 = vcvt.s32.f32 %v128_v18  ;;  %vm289_vm13 = vcmp.lt.s32.totalorder %v288_v23, 0 }
  0x52   :  { %v228_v13 = vsel %vm289_vm13, 0, %v288_v23 }
  0x53   :  { %v133_v25 = vand.u32 2147483647, %v132_v21  ;;  %v229_v28 = vsub.s32 32, %v228_v13  ;;  %v230_v31 = vshll.u32 %v221_v4, %v228_v13  ;;  %v233_v32 = vsub.s32 4294967266, %v228_v13 }
  0x55   :  { %v136_v11 = vmul.f32 %v135_v22, %v133_v25  ;;  %v231_v33 = vshrl.u32 %v213_v26, %v229_v28  ;;  %v234_v34 = vadd.s32 127, %v233_v32 }
  0x57   :  { %v137_v29 = vxor.u32 2147483648, %v136_v11  ;;  %v232_v38 = vor.u32 %v231_v33, %v230_v31  ;;  %v235_v39 = vshll.u32 %v234_v34, 23 }
  0x59   :  { %v138_v35 = vsel %vm55_vm14, %v137_v29, %v136_v11  ;;  %v236_v40 = vor.u32 4788187, %v235_v39  ;;  %v239_v41 = vcvt.s32.f32 %v232_v38 }
  0x5a   :  { %v141_v37 = vsel %vm54_vm15, %v391_v10, %v138_v35 }
  0x5b   :  { %308 = vcosq.f32 %v141_v37  ;;  %v237_v43 = vand.u32 2147483647, %v236_v40 }
  0x5c   :  { %310 = vsinq.f32 %v141_v37 }
  0x5d   :  { %v240_v30 = vmul.f32 %v239_v41, %v237_v43 }
  0x5f   :  { %v241_v45 = vxor.u32 2147483648, %v240_v30 }
  0x61   :  { %v242_v47 = vsel %vm159_vm0, %v241_v45, %v240_v30 }
  0x62   :  { %v245_v49 = vsel %vm456_vm1, %v395_v14, %v242_v47 }
  0x63   :  { %312 = vcosq.f32 %v245_v49 }
  0x64   :  { %314 = vsinq.f32 %v245_v49 }
  0x68   :  { %v309_v50 = vpop.eup %308 }
  0x69   :  { %v311_v52 = vpop.eup %310  ;;  %v153_v17 = vxor.u32 2147483648, %v309_v50 }
  0x6a   :  { %v150_v53 = vxor.u32 2147483648, %v311_v52 }
  0x6b   :  { %v154_v54 = vsel %vm152_vm2, %v153_v17, %v311_v52 }
  0x6c   :  { %v151_v57 = vsel %vm149_vm3, %v309_v50, %v150_v53 }
  0x6d   :  { %v155_v58 = vsel %vm148_vm4, %v151_v57, %v154_v54 }
  0x6e   :  { %v156_v59 = vsel %vm145_vm5, nan, %v155_v58 }
  0x6f   :  { %261 = vst [vmem:[#allocation5] sm:$0xff] %v156_v59 }
  0x70   :  { %v313_v55 = vpop.eup %312 }
  0x71   :  { %v315_v61 = vpop.eup %314  ;;  %v257_v62 = vxor.u32 2147483648, %v313_v55 }
  0x72   :  { %v254_v63 = vxor.u32 2147483648, %v315_v61 }
  0x73   :  { %v258_v0 = vsel %vm256_vm6, %v257_v62, %v315_v61 }
  0x74   :  { %v255_v10 = vsel %vm253_vm7, %v313_v55, %v254_v63 }
  0x75   :  { %v259_v1 = vsel %vm252_vm8, %v255_v10, %v258_v0 }
  0x76   :  { %v260_v2 = vsel %vm249_vm9, nan, %v259_v1 }
  0x77   :  { %262 = vst [vmem:[#allocation5 + $0x8] sm:$0xff] %v260_v2 }
  0x78   :  { %347 = shalt.err (!%p344_p9)
}
  0x79   :  { %s368_s18 = smov 128   ;;  %s369_s19 = smov 8  }
  0x7a   :  { %274 = dma.vmem_to_hbm [thread:$0]  %s269_s1, 256, %s472_s2, [#allocation4], %s368_s18, %s368_s18, %s369_s19  }
  0x7b   :  { %358 = dma.done.wait [#allocation4], 256  }
  0x7c   :  { %359 = vsyncadd [#allocation4], 4294967040 }
  0x7d   :  { %278 = vsyncpa [#allocation3], 1 }
  0x7e   :  { %279 = vsyncpa [#allocation4], 1 }

</bundles_post_ra>
